<compile_context>
chip_gen: v7x
topology: tpu7x:2x2x1
jax: 0.10.0
libtpu: 0.0.40
codegen_flags: <defaults>
</compile_context>

<pallas_src>
import jax
import jax.numpy as jnp
from jax.experimental import pallas as pl
from jax.experimental.pallas import tpu as pltpu


_TARGET_TILE_BYTES = 8 * 1024 * 1024     # ~8 MiB per tile (per buffer)
_VMEM_LIMIT_BYTES = 40 * 1024 * 1024     # > 2*(in+out) tiles, < 64 MiB (v7x)
_MAX_COLS = 2048                          # lane-dense, unmasked stores


def _pick_cols(n, max_cols):
    """Largest power-of-two multiple of 128 (<= max_cols) that divides n."""
    cols = 128
    while cols * 2 <= max_cols and n % (cols * 2) == 0:
        cols *= 2
    return cols


def _pick_block_rows(rows, target_rows, align):
    """Row-block size: prefer an exact divisor of `rows` aligned to `align`."""
    if rows <= target_rows:
        return rows  # single block along rows (full dim is always legal)
    r = max(align, (target_rows // align) * align)
    for br in range(r, align - 1, -align):
        if rows % br == 0:
            return br
    return r  # non-divisor: Pallas clips the boundary block (elementwise-safe)


def _sigmoid_2d(x2d, alpha_arr, block_rows, cols, donate_input):
    rows = x2d.shape[0]
    grid = (pl.cdiv(rows, block_rows),)

    def kernel(alpha_ref, x_ref, o_ref):
        a = alpha_ref[0, 0]                              # f32 scalar from SMEM
        xv = x_ref[...].astype(jnp.float32)              # always compute in f32
        den = 1.0 + jnp.exp(-a * xv)
        o_ref[...] = pl.reciprocal(den, approx=False).astype(o_ref.dtype)

    def build(dim_sem):
        return pl.pallas_call(
            kernel,
            out_shape=jax.ShapeDtypeStruct(x2d.shape, x2d.dtype),
            grid=grid,
            in_specs=[
                pl.BlockSpec((1, 1), lambda i: (0, 0), memory_space=pltpu.SMEM),
                pl.BlockSpec((block_rows, cols), lambda i: (i, 0)),
            ],
            out_specs=pl.BlockSpec((block_rows, cols), lambda i: (i, 0)),
            compiler_params=pltpu.CompilerParams(
                dimension_semantics=dim_sem,
                vmem_limit_bytes=_VMEM_LIMIT_BYTES,
            ),
            input_output_aliases=({1: 0} if donate_input else {}),
        )

    core_parallel = getattr(pltpu, "CORE_PARALLEL", None)
    if core_parallel is not None:
        try:
            out = build((core_parallel,))(alpha_arr, x2d)
            return jax.block_until_ready(out)
        except Exception:
            pass  # older toolchain / chip rejects CORE_PARALLEL -> fall back
    return build(("parallel",))(alpha_arr, x2d)


def variant_sigmoid(x, alpha, *, donate_input=False):
    """Elementwise y = 1 / (1 + exp(-alpha * x)); same shape/dtype as x."""
    orig_shape = x.shape
    orig_dtype = x.dtype
    n = x.size
    if n == 0:
        return x

    a32 = jnp.asarray(alpha, dtype=jnp.float32)
    alpha_arr = a32.reshape(1, 1)
    itemsize = jnp.dtype(orig_dtype).itemsize

    flat = x.reshape(-1)
    bulk_n = (n // 128) * 128

    if bulk_n == 0:
        # Tiny (<128 elems): plain JAX, a kernel launch isn't worth it.
        y = 1.0 / (1.0 + jnp.exp(-a32 * flat.astype(jnp.float32)))
        return y.astype(orig_dtype).reshape(orig_shape)

    cols = _pick_cols(bulk_n, _MAX_COLS)
    rows = bulk_n // cols
    row_align = max(8, 32 // itemsize)   # sublane packing: 8 f32, 16 bf16, 32 int8
    target_rows = max(row_align, _TARGET_TILE_BYTES // (cols * itemsize))
    block_rows = _pick_block_rows(rows, target_rows, row_align)

    bulk2d = flat[:bulk_n].reshape(rows, cols)
    out_flat = _sigmoid_2d(bulk2d, alpha_arr, block_rows, cols, donate_input).reshape(-1)

    if bulk_n != n:
        # Ragged tail (<128 elems): plain JAX, then concatenate (no pad/slice
        # round trips through HBM).
        tail = flat[bulk_n:].astype(jnp.float32)
        tail_y = (1.0 / (1.0 + jnp.exp(-a32 * tail))).astype(orig_dtype)
        out_flat = jnp.concatenate([out_flat, tail_y])

    return out_flat.reshape(orig_shape)


if __name__ == "__main__":
    key = jax.random.PRNGKey(0)
    alpha = 2.5

    # NCHW input, same convention as the PyTorch module (2*4*16*16 = 2048 elems).
    x = jax.random.normal(key, (2, 4, 16, 16), dtype=jnp.float32)
    y = variant_sigmoid(x, alpha)
    y = jax.block_until_ready(y)
    y_ref = 1.0 / (1.0 + jnp.exp(-alpha * x))
    assert y.shape == x.shape and y.dtype == x.dtype
    assert jnp.allclose(y, y_ref, atol=1e-6, rtol=1e-6)

    # Exercise the ragged-tail path (size not a multiple of 128).
    x2 = jax.random.normal(jax.random.PRNGKey(1), (2, 3, 67), dtype=jnp.float32)
    y2 = jax.block_until_ready(variant_sigmoid(x2, alpha))
    y2_ref = 1.0 / (1.0 + jnp.exp(-alpha * x2))
    assert y2.shape == x2.shape and y2.dtype == x2.dtype
    assert jnp.allclose(y2, y2_ref, atol=1e-6, rtol=1e-6)

    print("KERNEL_OK")
</pallas_src>

<mosaic_0001>
module attributes {stable_mosaic.version = 11 : i64} {
  func.func @kernel(%arg0: i32, %arg1: memref<1x1xf32, #tpu.memory_space<smem>>, %arg2: memref<1x2048xf32, #tpu.memory_space<vmem>>, %arg3: memref<1x2048xf32, #tpu.memory_space<vmem>>) attributes {dimension_semantics = [#tpu.dimension_semantics<core_parallel>], iteration_bounds = array<i64: 1>, scalar_prefetch = 0 : i64, scratch_operands = 0 : i64, tpu.core_type = #tpu.core_type<tc>, window_params = [{transform_indices = @transform_0, window_bounds = array<i64: 1, 1>}, {transform_indices = @transform_1, window_bounds = array<i64: 1, 2048>}, {transform_indices = @transform_2, window_bounds = array<i64: 1, 2048>}]} {
    %c0 = arith.constant 0 : index
    %c0_0 = arith.constant 0 : index
    %0 = memref.load %arg1[%c0, %c0_0] : memref<1x1xf32, #tpu.memory_space<smem>>
    %c0_1 = arith.constant 0 : index
    %c0_2 = arith.constant 0 : index
    %1 = vector.load %arg2[%c0_1, %c0_2] : memref<1x2048xf32, #tpu.memory_space<vmem>>, vector<1x2048xf32>
    %cst = arith.constant 0.000000e+00 : f32
    %2 = arith.subf %cst, %0 : f32
    %3 = vector.broadcast %2 : f32 to vector<1x2048xf32>
    %4 = arith.mulf %3, %1 : vector<1x2048xf32>
    %5 = math.exp %4 : vector<1x2048xf32>
    %cst_3 = arith.constant 1.000000e+00 : f32
    %6 = vector.broadcast %cst_3 : f32 to vector<1x2048xf32>
    %7 = arith.addf %6, %5 : vector<1x2048xf32>
    %8 = tpu.reciprocal %7 : vector<1x2048xf32> -> vector<1x2048xf32>
    %c0_4 = arith.constant 0 : index
    %c0_5 = arith.constant 0 : index
    %9 = vector.load %arg3[%c0_4, %c0_5] : memref<1x2048xf32, #tpu.memory_space<vmem>>, vector<1x2048xf32>
    tpu.vector_store %arg3[%c0_4, %c0_5], %8 {strides = array<i32>} : memref<1x2048xf32, #tpu.memory_space<vmem>>, vector<1x2048xf32>,
    return
  }
  func.func @transform_0(%arg0: i32) -> (i32, i32) {
    %c0_i32 = arith.constant 0 : i32
    %c0_i32_0 = arith.constant 0 : i32
    %c0_i32_1 = arith.constant 0 : i32
    return %c0_i32, %c0_i32_0 : i32, i32
  }
  func.func @transform_1(%arg0: i32) -> (i32, i32) {
    %c0_i32 = arith.constant 0 : i32
    %c0_i32_0 = arith.constant 0 : i32
    return %arg0, %c0_i32 : i32, i32
  }
  func.func @transform_2(%arg0: i32) -> (i32, i32) {
    %c0_i32 = arith.constant 0 : i32
    %c0_i32_0 = arith.constant 0 : i32
    return %arg0, %c0_i32 : i32, i32
  }
}

module attributes {stable_mosaic.version = 11 : i64} {
  func.func @kernel(%arg0: i32, %arg1: memref<1x1xf32, #tpu.memory_space<smem>>, %arg2: memref<1x2048xf32, #tpu.memory_space<vmem>>, %arg3: memref<1x2048xf32, #tpu.memory_space<vmem>>) attributes {dimension_semantics = [#tpu.dimension_semantics<parallel>], iteration_bounds = array<i64: 1>, scalar_prefetch = 0 : i64, scratch_operands = 0 : i64, tpu.core_type = #tpu.core_type<tc>, window_params = [{transform_indices = @transform_0, window_bounds = array<i64: 1, 1>}, {transform_indices = @transform_1, window_bounds = array<i64: 1, 2048>}, {transform_indices = @transform_2, window_bounds = array<i64: 1, 2048>}]} {
    %c0 = arith.constant 0 : index
    %c0_0 = arith.constant 0 : index
    %0 = memref.load %arg1[%c0, %c0_0] : memref<1x1xf32, #tpu.memory_space<smem>>
    %c0_1 = arith.constant 0 : index
    %c0_2 = arith.constant 0 : index
    %1 = vector.load %arg2[%c0_1, %c0_2] : memref<1x2048xf32, #tpu.memory_space<vmem>>, vector<1x2048xf32>
    %cst = arith.constant 0.000000e+00 : f32
    %2 = arith.subf %cst, %0 : f32
    %3 = vector.broadcast %2 : f32 to vector<1x2048xf32>
    %4 = arith.mulf %3, %1 : vector<1x2048xf32>
    %5 = math.exp %4 : vector<1x2048xf32>
    %cst_3 = arith.constant 1.000000e+00 : f32
    %6 = vector.broadcast %cst_3 : f32 to vector<1x2048xf32>
    %7 = arith.addf %6, %5 : vector<1x2048xf32>
    %8 = tpu.reciprocal %7 : vector<1x2048xf32> -> vector<1x2048xf32>
    %c0_4 = arith.constant 0 : index
    %c0_5 = arith.constant 0 : index
    %9 = vector.load %arg3[%c0_4, %c0_5] : memref<1x2048xf32, #tpu.memory_space<vmem>>, vector<1x2048xf32>
    tpu.vector_store %arg3[%c0_4, %c0_5], %8 {strides = array<i32>} : memref<1x2048xf32, #tpu.memory_space<vmem>>, vector<1x2048xf32>,
    return
  }
  func.func @transform_0(%arg0: i32) -> (i32, i32) {
    %c0_i32 = arith.constant 0 : i32
    %c0_i32_0 = arith.constant 0 : i32
    %c0_i32_1 = arith.constant 0 : i32
    return %c0_i32, %c0_i32_0 : i32, i32
  }
  func.func @transform_1(%arg0: i32) -> (i32, i32) {
    %c0_i32 = arith.constant 0 : i32
    %c0_i32_0 = arith.constant 0 : i32
    return %arg0, %c0_i32 : i32, i32
  }
  func.func @transform_2(%arg0: i32) -> (i32, i32) {
    %c0_i32 = arith.constant 0 : i32
    %c0_i32_0 = arith.constant 0 : i32
    return %arg0, %c0_i32 : i32, i32
  }
}

</mosaic_0001>

<bundles_post_ra>
// kernel: tpu_custom_call.1
= control target key start
LH: loop header
LB: loop body
LE: loop exit
PB: predicated region body
PF: predicated region fallthrough
CT: control target
= control target key end

     0   :  { %s152_s9 = sld [smem:[#allocation0]]   ;;  %s180_s0 = inlined_call_operand.<no memory space> [shape: f32[1,1], index: 0, kind: input, shape index: {}]   ;;  %s181_s1 = inlined_call_operand.hbm [shape: f32[1,2048], index: 1, kind: input, shape index: {}]   ;;  %s182_s2 = inlined_call_operand.hbm [shape: f32[1,2048], index: 2, kind: output, shape index: {}]  }
   0x1   :  { %8 = vsyncpa [#allocation4], 0 }
   0x2   :  { %9 = vsyncpa [#allocation5], 0  ;;  %s135_s14 = smov [#allocation3]   ;;  %s85_s19 = scalar_lea.hbm %s181_s1, 256 }
   0x3   :  { %s21_s15 = sshll.u32 %s135_s14, 4  ;;  %s22_s15 = int_to_ptr.vmem [resolvable:$true] %s21_s15 }
   0x6   :  { %s71_s10 = sshll.u32 %s152_s9, 8 }
   0x7   :  { %s19_s13 = scalar_lea.hbm %s181_s1, %s71_s10 }
   0x8   :  { %s83_s16 = scalar_lea.hbm %s19_s13, 256  ;;  %p86_p1 = scmp.lt.u32.totalorder %s19_s13, %s181_s1 }
   0x9   :  { %p84_p0 = scmp.ne.s32.totalorder %s19_s13, %s83_s16  ;;  %p87_p2 = scmp.lt.u32.totalorder %s85_s19, %s83_s16 }
   0xa   :  { %p89_p4 = scmp.lt.u32.totalorder %s83_s16, %s19_s13 }
   0xb   :  { %p88_p3 = por %p87_p2, %p86_p1 }
   0xd   :  { %p90_p5 = por %p89_p4, %p88_p3 }
   0xf   :  { %p91_p6 = pnand %p90_p5, %p84_p0 }
  0x11   :  { %94 = shalt.err (!%p91_p6)
}
  0x12   :  { %s95_s22 = scalar_lea.vmem %s22_s15, 256  ;;  %p100_p8 = scmp.lt.s32.totalorder %s22_s15, %s22_s15 }
  0x13   :  { %p96_p7 = scmp.ne.s32.totalorder %s22_s15, %s95_s22  ;;  %p101_p9 = scmp.lt.s32.totalorder %s95_s22, %s95_s22 }
  0x15   :  { %p102_p10 = por %p101_p9, %p100_p8 }
  0x17   :  { %p103_p11 = pnand %p102_p10, %p96_p7 }
  0x19   :  { %106 = shalt.err (!%p103_p11)
}
  0x1a   :  { %24 = dma.hbm_to_vmem [thread:$0]  %s19_s13, 256, %s22_s15, [#allocation4]  }
  0x1b   :  { %131 = dma.done.wait [#allocation4], 256  }
  0x1c   :  { %132 = vsyncadd [#allocation4], 4294967040  ;;  %s31_s1 = ssub.f32 0.0, %s180_s0  ;;  %v29_v1 = vld [vmem:[#allocation3] sm:$0xff]  ;;  %v30_v2 = vld [vmem:[#allocation3 + $0x8] sm:$0xff]  ;;  %s136_s25 = smov [#allocation6]  }
  0x1d   :  { %s54_s26 = sshll.u32 %s136_s25, 4  ;;  %s52_s28 = scalar_lea.hbm %s182_s2, %s71_s10  ;;  %s55_s26 = int_to_ptr.vmem [resolvable:$true] %s54_s26 }
  0x1e   :  { %v32_v0 = vstv %s31_s1  ;;  %s107_s29 = scalar_lea.vmem %s55_s26, 256  ;;  %p112_p13 = scmp.lt.s32.totalorder %s55_s26, %s55_s26 }
  0x1f   :  { %v33_v3 = vmul.f32 %v32_v0, %v29_v1  ;;  %v34_v4 = vmul.f32 %v32_v0, %v30_v2  ;;  %p108_p12 = scmp.ne.s32.totalorder %s55_s26, %s107_s29  ;;  %p113_p0 = scmp.lt.s32.totalorder %s107_s29, %s107_s29 }
  0x21   :  { %v35_v5 = vmul.f32 1.442695, %v33_v3  ;;  %v37_v6 = vmul.f32 1.442695, %v34_v4  ;;  %p114_p1 = por %p113_p0, %p112_p13 }
  0x23   :  { %75 = vpow2.f32 %v35_v5  ;;  %p115_p2 = pnand %p114_p1, %p108_p12 }
  0x24   :  { %77 = vpow2.f32 %v37_v6 }
  0x2d   :  { %v76_v7 = vpop.eup %75 }
  0x2e   :  { %v78_v8 = vpop.eup %77  ;;  %v39_v9 = vadd.f32 1.0, %v76_v7 }
  0x2f   :  { %v40_v10 = vadd.f32 1.0, %v78_v8 }
  0x30   :  { %79 = vrcp.f32 %v39_v9 }
  0x31   :  { %81 = vrcp.f32 %v40_v10 }
  0x3a   :  { %v80_v11 = vpop.eup %79 }
  0x3b   :  { %v82_v12 = vpop.eup %81  ;;  %43 = vst [vmem:[#allocation6] sm:$0xff] %v80_v11 }
  0x3c   :  { %44 = vst [vmem:[#allocation6 + $0x8] sm:$0xff] %v82_v12 }
  0x3d   :  { %118 = shalt.err (!%p115_p2)
}
  0x3e   :  { %s119_s30 = scalar_lea.hbm %s52_s28, 256  ;;  %s121_s5 = scalar_lea.hbm %s182_s2, 256 }
  0x3f   :  { %p120_p3 = scmp.ne.s32.totalorder %s52_s28, %s119_s30  ;;  %p122_p4 = scmp.lt.u32.totalorder %s52_s28, %s182_s2 }
  0x40   :  { %p123_p5 = scmp.lt.u32.totalorder %s121_s5, %s119_s30  ;;  %p125_p7 = scmp.lt.u32.totalorder %s119_s30, %s52_s28 }
  0x42   :  { %p124_p6 = por %p123_p5, %p122_p4 }
  0x44   :  { %p126_p8 = por %p125_p7, %p124_p6 }
  0x46   :  { %p127_p9 = pnand %p126_p8, %p120_p3 }
  0x48   :  { %130 = shalt.err (!%p127_p9)
}
  0x49   :  { %57 = dma.vmem_to_hbm [thread:$0]  %s55_s26, 256, %s52_s28, [#allocation5]  }
  0x4a   :  { %133 = dma.done.wait [#allocation5], 256  }
  0x4b   :  { %134 = vsyncadd [#allocation5], 4294967040 }
  0x4c   :  { %61 = vsyncpa [#allocation4], 1 }
  0x4d   :  { %62 = vsyncpa [#allocation5], 1 }

// kernel: tpu_custom_call.1
= control target key start
LH: loop header
LB: loop body
LE: loop exit
PB: predicated region body
PF: predicated region fallthrough
CT: control target
= control target key end

     0   :  { %8 = vsyncpa [#allocation4], 0  ;;  %s159_s0 = inlined_call_operand.<no memory space> [shape: f32[1,1], index: 0, kind: input, shape index: {}]   ;;  %s160_s1 = inlined_call_operand.hbm [shape: f32[1,2048], index: 1, kind: input, shape index: {}]   ;;  %s161_s2 = inlined_call_operand.hbm [shape: f32[1,2048], index: 2, kind: output, shape index: {}]  }
   0x1   :  { %9 = vsyncpa [#allocation5], 0  ;;  %s115_s9 = smov [#allocation3]   ;;  %s67_s13 = scalar_lea.hbm %s160_s1, 256 }
   0x2   :  { %s18_s10 = sshll.u32 %s115_s9, 4  ;;  %p68_p0 = scmp.ne.s32.totalorder %s160_s1, %s67_s13  ;;  %s19_s10 = int_to_ptr.vmem [resolvable:$true] %s18_s10 }
   0x3   :  { %p71_p1 = scmp.lt.u32.totalorder %s67_s13, %s160_s1 }
   0x5   :  { %p73_p2 = pnand %p71_p1, %p68_p0 }
   0x7   :  { %76 = shalt.err (!%p73_p2)
}
   0x8   :  { %s77_s18 = scalar_lea.vmem %s19_s10, 256  ;;  %p82_p4 = scmp.lt.s32.totalorder %s19_s10, %s19_s10 }
   0x9   :  { %p78_p3 = scmp.ne.s32.totalorder %s19_s10, %s77_s18  ;;  %p83_p5 = scmp.lt.s32.totalorder %s77_s18, %s77_s18 }
   0xb   :  { %p84_p6 = por %p83_p5, %p82_p4 }
   0xd   :  { %p85_p7 = pnand %p84_p6, %p78_p3 }
   0xf   :  { %88 = shalt.err (!%p85_p7)
}
  0x10   :  { %21 = dma.hbm_to_vmem [thread:$0]  %s160_s1, 256, %s19_s10, [#allocation4]  }
  0x11   :  { %111 = dma.done.wait [#allocation4], 256  }
  0x12   :  { %112 = vsyncadd [#allocation4], 4294967040  ;;  %s28_s23 = ssub.f32 0.0, %s159_s0  ;;  %v26_v1 = vld [vmem:[#allocation3] sm:$0xff]  ;;  %v27_v2 = vld [vmem:[#allocation3 + $0x8] sm:$0xff]  ;;  %s116_s1 = smov [#allocation6]  }
  0x13   :  { %s48_s24 = sshll.u32 %s116_s1, 4  ;;  %s49_s24 = int_to_ptr.vmem [resolvable:$true] %s48_s24 }
  0x14   :  { %v29_v0 = vstv %s28_s23  ;;  %s89_s0 = scalar_lea.vmem %s49_s24, 256  ;;  %p94_p9 = scmp.lt.s32.totalorder %s49_s24, %s49_s24 }
  0x15   :  { %v30_v3 = vmul.f32 %v29_v0, %v26_v1  ;;  %v31_v4 = vmul.f32 %v29_v0, %v27_v2  ;;  %p90_p8 = scmp.ne.s32.totalorder %s49_s24, %s89_s0  ;;  %p95_p10 = scmp.lt.s32.totalorder %s89_s0, %s89_s0 }
  0x17   :  { %v32_v5 = vmul.f32 1.442695, %v30_v3  ;;  %v34_v6 = vmul.f32 1.442695, %v31_v4  ;;  %p96_p11 = por %p95_p10, %p94_p9 }
  0x19   :  { %59 = vpow2.f32 %v32_v5  ;;  %p97_p12 = pnand %p96_p11, %p90_p8 }
  0x1a   :  { %61 = vpow2.f32 %v34_v6 }
  0x23   :  { %v60_v7 = vpop.eup %59 }
  0x24   :  { %v62_v8 = vpop.eup %61  ;;  %v36_v9 = vadd.f32 1.0, %v60_v7 }
  0x25   :  { %v37_v10 = vadd.f32 1.0, %v62_v8 }
  0x26   :  { %63 = vrcp.f32 %v36_v9 }
  0x27   :  { %65 = vrcp.f32 %v37_v10 }
  0x30   :  { %v64_v11 = vpop.eup %63 }
  0x31   :  { %v66_v12 = vpop.eup %65  ;;  %40 = vst [vmem:[#allocation6] sm:$0xff] %v64_v11 }
  0x32   :  { %41 = vst [vmem:[#allocation6 + $0x8] sm:$0xff] %v66_v12 }
  0x33   :  { %100 = shalt.err (!%p97_p12)
}
  0x34   :  { %s101_s27 = scalar_lea.hbm %s161_s2, 256 }
  0x35   :  { %p102_p13 = scmp.ne.s32.totalorder %s161_s2, %s101_s27  ;;  %p105_p0 = scmp.lt.u32.totalorder %s101_s27, %s161_s2 }
  0x37   :  { %p107_p1 = pnand %p105_p0, %p102_p13 }
  0x39   :  { %110 = shalt.err (!%p107_p1)
}
  0x3a   :  { %51 = dma.vmem_to_hbm [thread:$0]  %s49_s24, 256, %s161_s2, [#allocation5]  }
  0x3b   :  { %113 = dma.done.wait [#allocation5], 256  }
  0x3c   :  { %114 = vsyncadd [#allocation5], 4294967040 }
  0x3d   :  { %55 = vsyncpa [#allocation4], 1 }
  0x3e   :  { %56 = vsyncpa [#allocation5], 1 }

</bundles_post_ra>
